<compile_context>
chip_gen: v6e
topology: v6e:2x2x1
jax: 0.10.0
libtpu: 0.0.40
codegen_flags: <defaults>
</compile_context>

<pallas_src>
import functools
import math

import jax
import jax.numpy as jnp
from jax.experimental import pallas as pl
from jax.experimental.pallas import tpu as pltpu

LANES = 128
SUBLANES = 8


def _round_up(x, m):
    return -(-x // m) * m


def two_mat_kernel(fm_ref, sm_ref, scale_ref, idx_ref, out_ref,
                   *, k, second_k, n1, n2, sec_huddle):
    """fm_ref: (n1,) f32 SMEM, sm_ref: (n2,) f32 SMEM, scale_ref: (1,) f32 SMEM,
       idx_ref: (k + second_k, tile_rows, 128) i32 VMEM,
       out_ref: (tile_rows, 128) f32 VMEM."""

    def gather(idx, table_ref, n, base):
        # Tiny-table gather as a pure-VPU select chain (scalar-broadcast
        # operands, no XLU). `base` folds the sec_huddle offset into the
        # compare constant for free (same op count as base == 0).
        val = jnp.where(idx == base, table_ref[0], jnp.float32(0.0))
        for j in range(1, n):
            val = jnp.where(idx == base + j, table_ref[j], val)
        return val

    # prod(first_mat[_input[:, :k]], dim=1) -- initialized from the first
    # gathered value (no jnp.ones broadcast + extra multiply).
    prod = gather(idx_ref[0], fm_ref, n1, 0)
    for p in range(1, k):
        prod = prod * gather(idx_ref[p], fm_ref, n1, 0)

    # * prod(second_mat[_input[:, k:] - sec_huddle], dim=1)
    for p in range(second_k):
        prod = prod * gather(idx_ref[k + p], sm_ref, n2, sec_huddle)

    # Single precomputed normalization factor (hoisted to the wrapper).
    out_ref[...] = prod * scale_ref[0]


def two_mat_forward(indices, first_mat, second_mat, level_sq_sum,
                    *, k, second_k, sec_huddle, use_sec=True, tile_rows=512):
    assert use_sec, "kernel implemented for the use_sec=True configuration"
    bsz, seq = indices.shape
    assert seq == k + second_k
    n1 = int(first_mat.shape[0])
    n2 = int(second_mat.shape[0])

    # ---- lane-dense batch layout ------------------------------------------
    rows_needed = _round_up(-(-bsz // LANES), SUBLANES)      # ceil(bsz/128), sublane mult
    tile_rows = _round_up(max(SUBLANES, min(int(tile_rows), rows_needed)), SUBLANES)
    num_tiles = -(-rows_needed // tile_rows)
    rows_total = num_tiles * tile_rows
    b_pad = rows_total * LANES

    idx = indices.astype(jnp.int32)
    pad = b_pad - bsz
    if pad:
        # Pad with index 0: padded rows are discarded after the kernel.
        idx = jnp.pad(idx, ((0, pad), (0, 0)))
    idx = idx.T.reshape(seq, rows_total, LANES)              # (seq, rows, 128) lane-dense

    fm = first_mat.astype(jnp.float32)
    sm = second_mat.astype(jnp.float32)

    # ---- hoisted scalar normalization --------------------------------------
    scale = (jnp.asarray(level_sq_sum, jnp.float32) ** jnp.float32((k + second_k) / 2.0)
             * jnp.sum(fm * fm) ** jnp.float32(-k / 2.0)
             * jnp.sum(sm * sm) ** jnp.float32(-second_k / 2.0)).reshape(1)

    kernel = functools.partial(two_mat_kernel, k=k, second_k=second_k,
                               n1=n1, n2=n2, sec_huddle=sec_huddle)

    out = pl.pallas_call(
        kernel,
        out_shape=jax.ShapeDtypeStruct((rows_total, LANES), jnp.float32),
        grid=(num_tiles,),
        in_specs=[
            pl.BlockSpec(memory_space=pltpu.MemorySpace.SMEM),   # first_mat  (n1,)
            pl.BlockSpec(memory_space=pltpu.MemorySpace.SMEM),   # second_mat (n2,)
            pl.BlockSpec(memory_space=pltpu.MemorySpace.SMEM),   # scale      (1,)
            pl.BlockSpec((seq, tile_rows, LANES), lambda i: (0, i, 0)),
        ],
        out_specs=pl.BlockSpec((tile_rows, LANES), lambda i: (i, 0)),
        compiler_params=pltpu.CompilerParams(dimension_semantics=("parallel",)),
    )(fm, sm, scale, idx)

    return out.reshape(-1)[:bsz]


def two_mat_reference(indices, first_mat, second_mat, level_sq_sum,
                      *, k, second_k, sec_huddle):
    out = jnp.prod(first_mat[indices[:, :k]], axis=1)
    out = out / jnp.sum(jnp.square(first_mat)) ** (k / 2.0)
    out = out * jnp.prod(second_mat[indices[:, k:] - sec_huddle], axis=1)
    out = out / jnp.sum(jnp.square(second_mat)) ** (second_k / 2.0)
    return out * level_sq_sum ** ((k + second_k) / 2.0)


if __name__ == "__main__":
    # Module hyperparameters (small, consistent with the forward semantics).
    init_row, init_col = 4, 3
    k, second_k = 3, 2
    g_sq_sum = 2.0
    fixed = True
    sec_huddle = init_row * init_col          # 12
    level_sq_sum = math.exp(math.log(g_sq_sum) / (k + second_k))

    key = jax.random.PRNGKey(0)
    k_fm, k_sm, k_i1, k_i2 = jax.random.split(key, 4)

    # Parameters (torch.rand -> U[0, 1)), deterministic in-script init.
    first_mat = jax.random.uniform(k_fm, (init_row * init_col,), dtype=jnp.float32)
    second_mat = jax.random.uniform(k_sm, (init_col,), dtype=jnp.float32)

    # _input: (batch, k + second_k); first k cols index first_mat,
    # remaining cols index second_mat offset by sec_huddle.
    batch = 3000   # spans several lane rows and (with tile_rows=8) several grid steps
    first_part = jax.random.randint(k_i1, (batch, k), 0, sec_huddle, dtype=jnp.int32)
    second_part = jax.random.randint(
        k_i2, (batch, second_k), sec_huddle, sec_huddle + init_col, dtype=jnp.int32)
    _input = jnp.concatenate([first_part, second_part], axis=1)

    out = two_mat_forward(_input, first_mat, second_mat, level_sq_sum,
                          k=k, second_k=second_k, sec_huddle=sec_huddle,
                          tile_rows=8)     # small tiles here just to exercise the grid
    out = jax.block_until_ready(out)

    ref = two_mat_reference(_input, first_mat, second_mat, level_sq_sum,
                            k=k, second_k=second_k, sec_huddle=sec_huddle)
    assert out.shape == (batch,)
    assert jnp.allclose(out, ref, rtol=1e-4, atol=1e-6), (out[:8], ref[:8])

    print("KERNEL_OK")
</pallas_src>

<mosaic_0001>
module attributes {stable_mosaic.version = 11 : i64} {
  func.func @two_mat_kernel(%arg0: i32, %arg1: memref<12xf32, #tpu.memory_space<smem>>, %arg2: memref<3xf32, #tpu.memory_space<smem>>, %arg3: memref<1xf32, #tpu.memory_space<smem>>, %arg4: memref<5x8x128xi32, #tpu.memory_space<vmem>>, %arg5: memref<8x128xf32, #tpu.memory_space<vmem>>) attributes {dimension_semantics = [#tpu.dimension_semantics<parallel>], iteration_bounds = array<i64: 3>, scalar_prefetch = 0 : i64, scratch_operands = 0 : i64, tpu.core_type = #tpu.core_type<tc>, window_params = [{transform_indices = @transform_0, window_bounds = array<i64: 12>}, {transform_indices = @transform_1, window_bounds = array<i64: 3>}, {transform_indices = @transform_2, window_bounds = array<i64: 1>}, {transform_indices = @transform_3, window_bounds = array<i64: 5, 8, 128>}, {transform_indices = @transform_4, window_bounds = array<i64: 8, 128>}]} {
    %c0 = arith.constant 0 : index
    %c0_0 = arith.constant 0 : index
    %c0_1 = arith.constant 0 : index
    %0 = vector.load %arg4[%c0, %c0_0, %c0_1] : memref<5x8x128xi32, #tpu.memory_space<vmem>>, vector<1x8x128xi32>
    %1 = vector.shape_cast %0 : vector<1x8x128xi32> to vector<8x128xi32>
    %c0_i32 = arith.constant 0 : i32
    %2 = vector.broadcast %c0_i32 : i32 to vector<8x128xi32>
    %3 = arith.cmpi eq, %1, %2 : vector<8x128xi32>
    %c0_2 = arith.constant 0 : index
    %4 = memref.load %arg1[%c0_2] : memref<12xf32, #tpu.memory_space<smem>>
    %cst = arith.constant 0.000000e+00 : f32
    %5 = vector.broadcast %4 : f32 to vector<8x128xf32>
    %6 = vector.broadcast %cst : f32 to vector<8x128xf32>
    %7 = arith.select %3, %5, %6 : vector<8x128xi1>, vector<8x128xf32>
    %c1_i32 = arith.constant 1 : i32
    %8 = vector.broadcast %c1_i32 : i32 to vector<8x128xi32>
    %9 = arith.cmpi eq, %1, %8 : vector<8x128xi32>
    %c1 = arith.constant 1 : index
    %10 = memref.load %arg1[%c1] : memref<12xf32, #tpu.memory_space<smem>>
    %11 = vector.broadcast %10 : f32 to vector<8x128xf32>
    %12 = arith.select %9, %11, %7 : vector<8x128xi1>, vector<8x128xf32>
    %c2_i32 = arith.constant 2 : i32
    %13 = vector.broadcast %c2_i32 : i32 to vector<8x128xi32>
    %14 = arith.cmpi eq, %1, %13 : vector<8x128xi32>
    %c2 = arith.constant 2 : index
    %15 = memref.load %arg1[%c2] : memref<12xf32, #tpu.memory_space<smem>>
    %16 = vector.broadcast %15 : f32 to vector<8x128xf32>
    %17 = arith.select %14, %16, %12 : vector<8x128xi1>, vector<8x128xf32>
    %c3_i32 = arith.constant 3 : i32
    %18 = vector.broadcast %c3_i32 : i32 to vector<8x128xi32>
    %19 = arith.cmpi eq, %1, %18 : vector<8x128xi32>
    %c3 = arith.constant 3 : index
    %20 = memref.load %arg1[%c3] : memref<12xf32, #tpu.memory_space<smem>>
    %21 = vector.broadcast %20 : f32 to vector<8x128xf32>
    %22 = arith.select %19, %21, %17 : vector<8x128xi1>, vector<8x128xf32>
    %c4_i32 = arith.constant 4 : i32
    %23 = vector.broadcast %c4_i32 : i32 to vector<8x128xi32>
    %24 = arith.cmpi eq, %1, %23 : vector<8x128xi32>
    %c4 = arith.constant 4 : index
    %25 = memref.load %arg1[%c4] : memref<12xf32, #tpu.memory_space<smem>>
    %26 = vector.broadcast %25 : f32 to vector<8x128xf32>
    %27 = arith.select %24, %26, %22 : vector<8x128xi1>, vector<8x128xf32>
    %c5_i32 = arith.constant 5 : i32
    %28 = vector.broadcast %c5_i32 : i32 to vector<8x128xi32>
    %29 = arith.cmpi eq, %1, %28 : vector<8x128xi32>
    %c5 = arith.constant 5 : index
    %30 = memref.load %arg1[%c5] : memref<12xf32, #tpu.memory_space<smem>>
    %31 = vector.broadcast %30 : f32 to vector<8x128xf32>
    %32 = arith.select %29, %31, %27 : vector<8x128xi1>, vector<8x128xf32>
    %c6_i32 = arith.constant 6 : i32
    %33 = vector.broadcast %c6_i32 : i32 to vector<8x128xi32>
    %34 = arith.cmpi eq, %1, %33 : vector<8x128xi32>
    %c6 = arith.constant 6 : index
    %35 = memref.load %arg1[%c6] : memref<12xf32, #tpu.memory_space<smem>>
    %36 = vector.broadcast %35 : f32 to vector<8x128xf32>
    %37 = arith.select %34, %36, %32 : vector<8x128xi1>, vector<8x128xf32>
    %c7_i32 = arith.constant 7 : i32
    %38 = vector.broadcast %c7_i32 : i32 to vector<8x128xi32>
    %39 = arith.cmpi eq, %1, %38 : vector<8x128xi32>
    %c7 = arith.constant 7 : index
    %40 = memref.load %arg1[%c7] : memref<12xf32, #tpu.memory_space<smem>>
    %41 = vector.broadcast %40 : f32 to vector<8x128xf32>
    %42 = arith.select %39, %41, %37 : vector<8x128xi1>, vector<8x128xf32>
    %c8_i32 = arith.constant 8 : i32
    %43 = vector.broadcast %c8_i32 : i32 to vector<8x128xi32>
    %44 = arith.cmpi eq, %1, %43 : vector<8x128xi32>
    %c8 = arith.constant 8 : index
    %45 = memref.load %arg1[%c8] : memref<12xf32, #tpu.memory_space<smem>>
    %46 = vector.broadcast %45 : f32 to vector<8x128xf32>
    %47 = arith.select %44, %46, %42 : vector<8x128xi1>, vector<8x128xf32>
    %c9_i32 = arith.constant 9 : i32
    %48 = vector.broadcast %c9_i32 : i32 to vector<8x128xi32>
    %49 = arith.cmpi eq, %1, %48 : vector<8x128xi32>
    %c9 = arith.constant 9 : index
    %50 = memref.load %arg1[%c9] : memref<12xf32, #tpu.memory_space<smem>>
    %51 = vector.broadcast %50 : f32 to vector<8x128xf32>
    %52 = arith.select %49, %51, %47 : vector<8x128xi1>, vector<8x128xf32>
    %c10_i32 = arith.constant 10 : i32
    %53 = vector.broadcast %c10_i32 : i32 to vector<8x128xi32>
    %54 = arith.cmpi eq, %1, %53 : vector<8x128xi32>
    %c10 = arith.constant 10 : index
    %55 = memref.load %arg1[%c10] : memref<12xf32, #tpu.memory_space<smem>>
    %56 = vector.broadcast %55 : f32 to vector<8x128xf32>
    %57 = arith.select %54, %56, %52 : vector<8x128xi1>, vector<8x128xf32>
    %c11_i32 = arith.constant 11 : i32
    %58 = vector.broadcast %c11_i32 : i32 to vector<8x128xi32>
    %59 = arith.cmpi eq, %1, %58 : vector<8x128xi32>
    %c11 = arith.constant 11 : index
    %60 = memref.load %arg1[%c11] : memref<12xf32, #tpu.memory_space<smem>>
    %61 = vector.broadcast %60 : f32 to vector<8x128xf32>
    %62 = arith.select %59, %61, %57 : vector<8x128xi1>, vector<8x128xf32>
    %c1_3 = arith.constant 1 : index
    %c0_4 = arith.constant 0 : index
    %c0_5 = arith.constant 0 : index
    %63 = vector.load %arg4[%c1_3, %c0_4, %c0_5] : memref<5x8x128xi32, #tpu.memory_space<vmem>>, vector<1x8x128xi32>
    %64 = vector.shape_cast %63 : vector<1x8x128xi32> to vector<8x128xi32>
    %c0_i32_6 = arith.constant 0 : i32
    %65 = vector.broadcast %c0_i32_6 : i32 to vector<8x128xi32>
    %66 = arith.cmpi eq, %64, %65 : vector<8x128xi32>
    %c0_7 = arith.constant 0 : index
    %67 = memref.load %arg1[%c0_7] : memref<12xf32, #tpu.memory_space<smem>>
    %cst_8 = arith.constant 0.000000e+00 : f32
    %68 = vector.broadcast %67 : f32 to vector<8x128xf32>
    %69 = vector.broadcast %cst_8 : f32 to vector<8x128xf32>
    %70 = arith.select %66, %68, %69 : vector<8x128xi1>, vector<8x128xf32>
    %c1_i32_9 = arith.constant 1 : i32
    %71 = vector.broadcast %c1_i32_9 : i32 to vector<8x128xi32>
    %72 = arith.cmpi eq, %64, %71 : vector<8x128xi32>
    %c1_10 = arith.constant 1 : index
    %73 = memref.load %arg1[%c1_10] : memref<12xf32, #tpu.memory_space<smem>>
    %74 = vector.broadcast %73 : f32 to vector<8x128xf32>
    %75 = arith.select %72, %74, %70 : vector<8x128xi1>, vector<8x128xf32>
    %c2_i32_11 = arith.constant 2 : i32
    %76 = vector.broadcast %c2_i32_11 : i32 to vector<8x128xi32>
    %77 = arith.cmpi eq, %64, %76 : vector<8x128xi32>
    %c2_12 = arith.constant 2 : index
    %78 = memref.load %arg1[%c2_12] : memref<12xf32, #tpu.memory_space<smem>>
    %79 = vector.broadcast %78 : f32 to vector<8x128xf32>
    %80 = arith.select %77, %79, %75 : vector<8x128xi1>, vector<8x128xf32>
    %c3_i32_13 = arith.constant 3 : i32
    %81 = vector.broadcast %c3_i32_13 : i32 to vector<8x128xi32>
    %82 = arith.cmpi eq, %64, %81 : vector<8x128xi32>
    %c3_14 = arith.constant 3 : index
    %83 = memref.load %arg1[%c3_14] : memref<12xf32, #tpu.memory_space<smem>>
    %84 = vector.broadcast %83 : f32 to vector<8x128xf32>
    %85 = arith.select %82, %84, %80 : vector<8x128xi1>, vector<8x128xf32>
    %c4_i32_15 = arith.constant 4 : i32
    %86 = vector.broadcast %c4_i32_15 : i32 to vector<8x128xi32>
    %87 = arith.cmpi eq, %64, %86 : vector<8x128xi32>
    %c4_16 = arith.constant 4 : index
    %88 = memref.load %arg1[%c4_16] : memref<12xf32, #tpu.memory_space<smem>>
    %89 = vector.broadcast %88 : f32 to vector<8x128xf32>
    %90 = arith.select %87, %89, %85 : vector<8x128xi1>, vector<8x128xf32>
    %c5_i32_17 = arith.constant 5 : i32
    %91 = vector.broadcast %c5_i32_17 : i32 to vector<8x128xi32>
    %92 = arith.cmpi eq, %64, %91 : vector<8x128xi32>
    %c5_18 = arith.constant 5 : index
    %93 = memref.load %arg1[%c5_18] : memref<12xf32, #tpu.memory_space<smem>>
    %94 = vector.broadcast %93 : f32 to vector<8x128xf32>
    %95 = arith.select %92, %94, %90 : vector<8x128xi1>, vector<8x128xf32>
    %c6_i32_19 = arith.constant 6 : i32
    %96 = vector.broadcast %c6_i32_19 : i32 to vector<8x128xi32>
    %97 = arith.cmpi eq, %64, %96 : vector<8x128xi32>
    %c6_20 = arith.constant 6 : index
    %98 = memref.load %arg1[%c6_20] : memref<12xf32, #tpu.memory_space<smem>>
    %99 = vector.broadcast %98 : f32 to vector<8x128xf32>
    %100 = arith.select %97, %99, %95 : vector<8x128xi1>, vector<8x128xf32>
    %c7_i32_21 = arith.constant 7 : i32
    %101 = vector.broadcast %c7_i32_21 : i32 to vector<8x128xi32>
    %102 = arith.cmpi eq, %64, %101 : vector<8x128xi32>
    %c7_22 = arith.constant 7 : index
    %103 = memref.load %arg1[%c7_22] : memref<12xf32, #tpu.memory_space<smem>>
    %104 = vector.broadcast %103 : f32 to vector<8x128xf32>
    %105 = arith.select %102, %104, %100 : vector<8x128xi1>, vector<8x128xf32>
    %c8_i32_23 = arith.constant 8 : i32
    %106 = vector.broadcast %c8_i32_23 : i32 to vector<8x128xi32>
    %107 = arith.cmpi eq, %64, %106 : vector<8x128xi32>
    %c8_24 = arith.constant 8 : index
    %108 = memref.load %arg1[%c8_24] : memref<12xf32, #tpu.memory_space<smem>>
    %109 = vector.broadcast %108 : f32 to vector<8x128xf32>
    %110 = arith.select %107, %109, %105 : vector<8x128xi1>, vector<8x128xf32>
    %c9_i32_25 = arith.constant 9 : i32
    %111 = vector.broadcast %c9_i32_25 : i32 to vector<8x128xi32>
    %112 = arith.cmpi eq, %64, %111 : vector<8x128xi32>
    %c9_26 = arith.constant 9 : index
    %113 = memref.load %arg1[%c9_26] : memref<12xf32, #tpu.memory_space<smem>>
    %114 = vector.broadcast %113 : f32 to vector<8x128xf32>
    %115 = arith.select %112, %114, %110 : vector<8x128xi1>, vector<8x128xf32>
    %c10_i32_27 = arith.constant 10 : i32
    %116 = vector.broadcast %c10_i32_27 : i32 to vector<8x128xi32>
    %117 = arith.cmpi eq, %64, %116 : vector<8x128xi32>
    %c10_28 = arith.constant 10 : index
    %118 = memref.load %arg1[%c10_28] : memref<12xf32, #tpu.memory_space<smem>>
    %119 = vector.broadcast %118 : f32 to vector<8x128xf32>
    %120 = arith.select %117, %119, %115 : vector<8x128xi1>, vector<8x128xf32>
    %c11_i32_29 = arith.constant 11 : i32
    %121 = vector.broadcast %c11_i32_29 : i32 to vector<8x128xi32>
    %122 = arith.cmpi eq, %64, %121 : vector<8x128xi32>
    %c11_30 = arith.constant 11 : index
    %123 = memref.load %arg1[%c11_30] : memref<12xf32, #tpu.memory_space<smem>>
    %124 = vector.broadcast %123 : f32 to vector<8x128xf32>
    %125 = arith.select %122, %124, %120 : vector<8x128xi1>, vector<8x128xf32>
    %126 = arith.mulf %62, %125 : vector<8x128xf32>
    %c2_31 = arith.constant 2 : index
    %c0_32 = arith.constant 0 : index
    %c0_33 = arith.constant 0 : index
    %127 = vector.load %arg4[%c2_31, %c0_32, %c0_33] : memref<5x8x128xi32, #tpu.memory_space<vmem>>, vector<1x8x128xi32>
    %128 = vector.shape_cast %127 : vector<1x8x128xi32> to vector<8x128xi32>
    %c0_i32_34 = arith.constant 0 : i32
    %129 = vector.broadcast %c0_i32_34 : i32 to vector<8x128xi32>
    %130 = arith.cmpi eq, %128, %129 : vector<8x128xi32>
    %c0_35 = arith.constant 0 : index
    %131 = memref.load %arg1[%c0_35] : memref<12xf32, #tpu.memory_space<smem>>
    %cst_36 = arith.constant 0.000000e+00 : f32
    %132 = vector.broadcast %131 : f32 to vector<8x128xf32>
    %133 = vector.broadcast %cst_36 : f32 to vector<8x128xf32>
    %134 = arith.select %130, %132, %133 : vector<8x128xi1>, vector<8x128xf32>
    %c1_i32_37 = arith.constant 1 : i32
    %135 = vector.broadcast %c1_i32_37 : i32 to vector<8x128xi32>
    %136 = arith.cmpi eq, %128, %135 : vector<8x128xi32>
    %c1_38 = arith.constant 1 : index
    %137 = memref.load %arg1[%c1_38] : memref<12xf32, #tpu.memory_space<smem>>
    %138 = vector.broadcast %137 : f32 to vector<8x128xf32>
    %139 = arith.select %136, %138, %134 : vector<8x128xi1>, vector<8x128xf32>
    %c2_i32_39 = arith.constant 2 : i32
    %140 = vector.broadcast %c2_i32_39 : i32 to vector<8x128xi32>
    %141 = arith.cmpi eq, %128, %140 : vector<8x128xi32>
    %c2_40 = arith.constant 2 : index
    %142 = memref.load %arg1[%c2_40] : memref<12xf32, #tpu.memory_space<smem>>
    %143 = vector.broadcast %142 : f32 to vector<8x128xf32>
    %144 = arith.select %141, %143, %139 : vector<8x128xi1>, vector<8x128xf32>
    %c3_i32_41 = arith.constant 3 : i32
    %145 = vector.broadcast %c3_i32_41 : i32 to vector<8x128xi32>
    %146 = arith.cmpi eq, %128, %145 : vector<8x128xi32>
    %c3_42 = arith.constant 3 : index
    %147 = memref.load %arg1[%c3_42] : memref<12xf32, #tpu.memory_space<smem>>
    %148 = vector.broadcast %147 : f32 to vector<8x128xf32>
    %149 = arith.select %146, %148, %144 : vector<8x128xi1>, vector<8x128xf32>
    %c4_i32_43 = arith.constant 4 : i32
    %150 = vector.broadcast %c4_i32_43 : i32 to vector<8x128xi32>
    %151 = arith.cmpi eq, %128, %150 : vector<8x128xi32>
    %c4_44 = arith.constant 4 : index
    %152 = memref.load %arg1[%c4_44] : memref<12xf32, #tpu.memory_space<smem>>
    %153 = vector.broadcast %152 : f32 to vector<8x128xf32>
    %154 = arith.select %151, %153, %149 : vector<8x128xi1>, vector<8x128xf32>
    %c5_i32_45 = arith.constant 5 : i32
    %155 = vector.broadcast %c5_i32_45 : i32 to vector<8x128xi32>
    %156 = arith.cmpi eq, %128, %155 : vector<8x128xi32>
    %c5_46 = arith.constant 5 : index
    %157 = memref.load %arg1[%c5_46] : memref<12xf32, #tpu.memory_space<smem>>
    %158 = vector.broadcast %157 : f32 to vector<8x128xf32>
    %159 = arith.select %156, %158, %154 : vector<8x128xi1>, vector<8x128xf32>
    %c6_i32_47 = arith.constant 6 : i32
    %160 = vector.broadcast %c6_i32_47 : i32 to vector<8x128xi32>
    %161 = arith.cmpi eq, %128, %160 : vector<8x128xi32>
    %c6_48 = arith.constant 6 : index
    %162 = memref.load %arg1[%c6_48] : memref<12xf32, #tpu.memory_space<smem>>
    %163 = vector.broadcast %162 : f32 to vector<8x128xf32>
    %164 = arith.select %161, %163, %159 : vector<8x128xi1>, vector<8x128xf32>
    %c7_i32_49 = arith.constant 7 : i32
    %165 = vector.broadcast %c7_i32_49 : i32 to vector<8x128xi32>
    %166 = arith.cmpi eq, %128, %165 : vector<8x128xi32>
    %c7_50 = arith.constant 7 : index
    %167 = memref.load %arg1[%c7_50] : memref<12xf32, #tpu.memory_space<smem>>
    %168 = vector.broadcast %167 : f32 to vector<8x128xf32>
    %169 = arith.select %166, %168, %164 : vector<8x128xi1>, vector<8x128xf32>
    %c8_i32_51 = arith.constant 8 : i32
    %170 = vector.broadcast %c8_i32_51 : i32 to vector<8x128xi32>
    %171 = arith.cmpi eq, %128, %170 : vector<8x128xi32>
    %c8_52 = arith.constant 8 : index
    %172 = memref.load %arg1[%c8_52] : memref<12xf32, #tpu.memory_space<smem>>
    %173 = vector.broadcast %172 : f32 to vector<8x128xf32>
    %174 = arith.select %171, %173, %169 : vector<8x128xi1>, vector<8x128xf32>
    %c9_i32_53 = arith.constant 9 : i32
    %175 = vector.broadcast %c9_i32_53 : i32 to vector<8x128xi32>
    %176 = arith.cmpi eq, %128, %175 : vector<8x128xi32>
    %c9_54 = arith.constant 9 : index
    %177 = memref.load %arg1[%c9_54] : memref<12xf32, #tpu.memory_space<smem>>
    %178 = vector.broadcast %177 : f32 to vector<8x128xf32>
    %179 = arith.select %176, %178, %174 : vector<8x128xi1>, vector<8x128xf32>
    %c10_i32_55 = arith.constant 10 : i32
    %180 = vector.broadcast %c10_i32_55 : i32 to vector<8x128xi32>
    %181 = arith.cmpi eq, %128, %180 : vector<8x128xi32>
    %c10_56 = arith.constant 10 : index
    %182 = memref.load %arg1[%c10_56] : memref<12xf32, #tpu.memory_space<smem>>
    %183 = vector.broadcast %182 : f32 to vector<8x128xf32>
    %184 = arith.select %181, %183, %179 : vector<8x128xi1>, vector<8x128xf32>
    %c11_i32_57 = arith.constant 11 : i32
    %185 = vector.broadcast %c11_i32_57 : i32 to vector<8x128xi32>
    %186 = arith.cmpi eq, %128, %185 : vector<8x128xi32>
    %c11_58 = arith.constant 11 : index
    %187 = memref.load %arg1[%c11_58] : memref<12xf32, #tpu.memory_space<smem>>
    %188 = vector.broadcast %187 : f32 to vector<8x128xf32>
    %189 = arith.select %186, %188, %184 : vector<8x128xi1>, vector<8x128xf32>
    %190 = arith.mulf %126, %189 : vector<8x128xf32>
    %c3_59 = arith.constant 3 : index
    %c0_60 = arith.constant 0 : index
    %c0_61 = arith.constant 0 : index
    %191 = vector.load %arg4[%c3_59, %c0_60, %c0_61] : memref<5x8x128xi32, #tpu.memory_space<vmem>>, vector<1x8x128xi32>
    %192 = vector.shape_cast %191 : vector<1x8x128xi32> to vector<8x128xi32>
    %c12_i32 = arith.constant 12 : i32
    %193 = vector.broadcast %c12_i32 : i32 to vector<8x128xi32>
    %194 = arith.cmpi eq, %192, %193 : vector<8x128xi32>
    %c0_62 = arith.constant 0 : index
    %195 = memref.load %arg2[%c0_62] : memref<3xf32, #tpu.memory_space<smem>>
    %cst_63 = arith.constant 0.000000e+00 : f32
    %196 = vector.broadcast %195 : f32 to vector<8x128xf32>
    %197 = vector.broadcast %cst_63 : f32 to vector<8x128xf32>
    %198 = arith.select %194, %196, %197 : vector<8x128xi1>, vector<8x128xf32>
    %c13_i32 = arith.constant 13 : i32
    %199 = vector.broadcast %c13_i32 : i32 to vector<8x128xi32>
    %200 = arith.cmpi eq, %192, %199 : vector<8x128xi32>
    %c1_64 = arith.constant 1 : index
    %201 = memref.load %arg2[%c1_64] : memref<3xf32, #tpu.memory_space<smem>>
    %202 = vector.broadcast %201 : f32 to vector<8x128xf32>
    %203 = arith.select %200, %202, %198 : vector<8x128xi1>, vector<8x128xf32>
    %c14_i32 = arith.constant 14 : i32
    %204 = vector.broadcast %c14_i32 : i32 to vector<8x128xi32>
    %205 = arith.cmpi eq, %192, %204 : vector<8x128xi32>
    %c2_65 = arith.constant 2 : index
    %206 = memref.load %arg2[%c2_65] : memref<3xf32, #tpu.memory_space<smem>>
    %207 = vector.broadcast %206 : f32 to vector<8x128xf32>
    %208 = arith.select %205, %207, %203 : vector<8x128xi1>, vector<8x128xf32>
    %209 = arith.mulf %190, %208 : vector<8x128xf32>
    %c4_66 = arith.constant 4 : index
    %c0_67 = arith.constant 0 : index
    %c0_68 = arith.constant 0 : index
    %210 = vector.load %arg4[%c4_66, %c0_67, %c0_68] : memref<5x8x128xi32, #tpu.memory_space<vmem>>, vector<1x8x128xi32>
    %211 = vector.shape_cast %210 : vector<1x8x128xi32> to vector<8x128xi32>
    %c12_i32_69 = arith.constant 12 : i32
    %212 = vector.broadcast %c12_i32_69 : i32 to vector<8x128xi32>
    %213 = arith.cmpi eq, %211, %212 : vector<8x128xi32>
    %c0_70 = arith.constant 0 : index
    %214 = memref.load %arg2[%c0_70] : memref<3xf32, #tpu.memory_space<smem>>
    %cst_71 = arith.constant 0.000000e+00 : f32
    %215 = vector.broadcast %214 : f32 to vector<8x128xf32>
    %216 = vector.broadcast %cst_71 : f32 to vector<8x128xf32>
    %217 = arith.select %213, %215, %216 : vector<8x128xi1>, vector<8x128xf32>
    %c13_i32_72 = arith.constant 13 : i32
    %218 = vector.broadcast %c13_i32_72 : i32 to vector<8x128xi32>
    %219 = arith.cmpi eq, %211, %218 : vector<8x128xi32>
    %c1_73 = arith.constant 1 : index
    %220 = memref.load %arg2[%c1_73] : memref<3xf32, #tpu.memory_space<smem>>
    %221 = vector.broadcast %220 : f32 to vector<8x128xf32>
    %222 = arith.select %219, %221, %217 : vector<8x128xi1>, vector<8x128xf32>
    %c14_i32_74 = arith.constant 14 : i32
    %223 = vector.broadcast %c14_i32_74 : i32 to vector<8x128xi32>
    %224 = arith.cmpi eq, %211, %223 : vector<8x128xi32>
    %c2_75 = arith.constant 2 : index
    %225 = memref.load %arg2[%c2_75] : memref<3xf32, #tpu.memory_space<smem>>
    %226 = vector.broadcast %225 : f32 to vector<8x128xf32>
    %227 = arith.select %224, %226, %222 : vector<8x128xi1>, vector<8x128xf32>
    %228 = arith.mulf %209, %227 : vector<8x128xf32>
    %c0_76 = arith.constant 0 : index
    %229 = memref.load %arg3[%c0_76] : memref<1xf32, #tpu.memory_space<smem>>
    %230 = vector.broadcast %229 : f32 to vector<8x128xf32>
    %231 = arith.mulf %228, %230 : vector<8x128xf32>
    %c0_77 = arith.constant 0 : index
    %c0_78 = arith.constant 0 : index
    %232 = vector.load %arg5[%c0_77, %c0_78] : memref<8x128xf32, #tpu.memory_space<vmem>>, vector<8x128xf32>
    tpu.vector_store %arg5[%c0_77, %c0_78], %231 {strides = array<i32>} : memref<8x128xf32, #tpu.memory_space<vmem>>, vector<8x128xf32>,
    return
  }
  func.func @transform_0(%arg0: i32) -> i32 {
    %c0_i32 = arith.constant 0 : i32
    %c0_i32_0 = arith.constant 0 : i32
    return %c0_i32 : i32
  }
  func.func @transform_1(%arg0: i32) -> i32 {
    %c0_i32 = arith.constant 0 : i32
    %c0_i32_0 = arith.constant 0 : i32
    return %c0_i32 : i32
  }
  func.func @transform_2(%arg0: i32) -> i32 {
    %c0_i32 = arith.constant 0 : i32
    %c0_i32_0 = arith.constant 0 : i32
    return %c0_i32 : i32
  }
  func.func @transform_3(%arg0: i32) -> (i32, i32, i32) {
    %c0_i32 = arith.constant 0 : i32
    %c0_i32_0 = arith.constant 0 : i32
    %c0_i32_1 = arith.constant 0 : i32
    return %c0_i32, %arg0, %c0_i32_0 : i32, i32, i32
  }
  func.func @transform_4(%arg0: i32) -> (i32, i32) {
    %c0_i32 = arith.constant 0 : i32
    %c0_i32_0 = arith.constant 0 : i32
    return %arg0, %c0_i32 : i32, i32
  }
}

</mosaic_0001>

<bundles_post_ra>
// kernel: tpu_custom_call.1
= control target key start
LH: loop header
LB: loop body
LE: loop exit
PB: predicated region body
PF: predicated region fallthrough
CT: control target
= control target key end

     0   :  { %s1059_s0 = inlined_call_operand.vmem [shape: f32[12], index: 0, kind: input, shape index: {}]   ;;  %s1060_s1 = inlined_call_operand.vmem [shape: f32[3], index: 1, kind: input, shape index: {}]   ;;  %s1061_s2 = inlined_call_operand.<no memory space> [shape: f32[1], index: 2, kind: input, shape index: {}]   ;;  %s1062_s3 = inlined_call_operand.hbm [shape: s32[5,24,128], index: 3, kind: input, shape index: {}]   ;;  %s1063_s4 = inlined_call_operand.hbm [shape: f32[24,128], index: 4, kind: output, shape index: {}]  }
   0x1   :  { %9 = sst [smem:[#allocation2]] %s1061_s2 }
   0x2   :  { %10 = vsyncpa [#allocation6], 0 }
   0x3   :  { %11 = vsyncpa [#allocation8], 0 }
   0x4   :  { %12 = vsyncpa [#allocation4], 0 }
   0x5   :  { %14 = vsyncpa [#allocation4 + $0x1], 0 }
   0x6   :  { %15 = vsyncpa [#allocation5], 0 }
   0x7   :  { %17 = vsyncpa [#allocation5 + $0x1], 0  ;;  %s750_s17 = smov 0   ;;  %s752_s18 = smov 0  }
   0x8   :  { %s754_s19 = smov 0   ;;  %s756_s20 = smov 0  }
   0x9 LB: > { %s771_s2 = sadd.s32 4294967295, %s713_s20   ;;  %s480_s21 = sadd.s32 4294967294, %s713_s20   ;;  %s713_s20 = sphi %s756_s20, %s1095_s20   ;;  %s709_s19 = sphi %s754_s19, %s1094_s19   ;;  %s705_s18 = sphi %s752_s18, %s1093_s18   ;;  %s701_s17 = sphi %s750_s17, %s1092_s17  }
   0xa   : > { %s775_s22 = sadd.s32 1, %s713_s20   ;;  %s93_s23 = sadd.s32 1, %s709_s19 }
   0xb   : > { %s90_s24 = ssub.s32 %s713_s20, %s775_s22  ;;  %p100_p0 = scmp.ne.s32.totalorder %s709_s19, %s705_s18 }
   0xc   : > { %p91_p1 = scmp.eq.s32.totalorder %s90_s24, 0  ;;  %p101_p2 = scmp.eq.s32.totalorder %s713_s20, 0 }
   0xd   : > { %p106_p3 = scmp.ne.s32.totalorder %s705_s18, %s701_s17  ;;  %p1064_p4 = scmp.eq.s32.totalorder %s771_s2, 0 }
   0xe   : > { %s787_s25 = scalar_select %p91_p1, %s709_s19, %s93_s23  }
   0xf   : > { %p789_p5 = por %p101_p2, %p100_p0  ;;  %p795_p6 = por %p1064_p4, %p106_p3 }
  0x10   : > { %p130_p7 = scmp.eq.s32.totalorder %s771_s2, 2  ;;  %p136_p8 = scmp.eq.s32.totalorder %s480_s21, 2 }
  0x11   : > { %s1070_s27 = scalar_select %p795_p6, 1, 0 }
  0x12   : > { %p481_p9 = scmp.ge.s32.totalorder %s713_s20, 1  ;;  %p143_p10 = scmp.lt.s32.totalorder %s713_s20, 4 }
  0x13   : > { %p802_p11 = por %p130_p7, %p100_p0  ;;  %p806_p12 = por %p136_p8, %p106_p3 }
  0x14   : > { %p810_p13 = pnand %p481_p9, %p143_p10  ;;  %s156_s7 = sshll.u32 %s1059_s0, 4  ;;  %s157_s7 = int_to_ptr.vmem [resolvable:$true] %s156_s7 }
  0x15   : > { %s1071_s28 = scalar_select %p802_p11, 1, 0 }
  0x16   : > { %s1072_s29 = scalar_select %p806_p12, 1, 0 }
  0x17   : > { %s1073_s30 = scalar_select %p810_p13, 1, 0 }
  0x18   : > { %p525_p1 = pneg %p810_p13  ;;  %p542_p0 = scmp.lt.s32.totalorder %s713_s20, 3 }
  0x19   : > { %s167_s11 = sshll.u32 %s1060_s1, 4  ;;  %s583_s13 = scalar_lea.vmem %s157_s7, 16  ;;  %s168_s11 = int_to_ptr.vmem [resolvable:$true] %s167_s11 }
  0x1a   : > { %p822_p2 = pnand %p525_p1, %p1064_p4  ;;  %p831_p3 = pnand %p542_p0, %p789_p5 }
  0x1b   : > { %p584_p7 = scmp.ne.s32.totalorder %s157_s7, %s583_s13  ;;  %p591_p1 = scmp.lt.s32.totalorder %s157_s7, %s157_s7 }
  0x1c   : > { %s1075_s12 = scalar_select %p831_p3, 1, 0 }
  0x1d   : > { %p585_p8 = pneg %p822_p2  ;;  %p592_p4 = scmp.lt.s32.totalorder %s583_s13, %s583_s13 }
  0x1f   : > { %p586_p9 = pnand %p585_p8, %p584_p7  ;;  %p593_p12 = por %p592_p4, %p591_p1 }
  0x21   : > { %p587_p10 = pneg %p586_p9 }
  0x23   : > { %p594_p11 = pnand %p593_p12, %p587_p10 }
  0x25   : > { %597 = shalt.err (!%p594_p11)
}
  0x26   : > { %s715_s14 = smov [#allocation3]   ;;  %s181_s15 = sand.u32 1, %s709_s19  }
  0x27   : > { %528 = dma.vmem_to_smem (!%p822_p2), %s157_s7, 16, %s715_s14, [#allocation6]  }
  0x28   : > { %s598_s16 = scalar_lea.vmem %s168_s11, 16  ;;  %p606_p7 = scmp.lt.s32.totalorder %s168_s11, %s168_s11 }
  0x29   : > { %p599_p5 = scmp.ne.s32.totalorder %s168_s11, %s598_s16  ;;  %p607_p9 = scmp.lt.s32.totalorder %s598_s16, %s598_s16 }
  0x2b   : > { %p601_p0 = pnand %p599_p5, %p585_p8  ;;  %p608_p13 = por %p607_p9, %p606_p7 }
  0x2d   : > { %p602_p6 = pneg %p601_p0 }
  0x2f   : > { %p609_p3 = pnand %p608_p13, %p602_p6 }
  0x31   : > { %612 = shalt.err (!%p609_p3)
}
  0x32   : > { %s716_s21 = smov [#allocation7]   ;;  %s511_s23 = smul.u32 40, %s181_s15 }
  0x33   : > { %531 = dma.vmem_to_smem (!%p822_p2), %s168_s11, 16, %s716_s21, [#allocation8]  }
  0x34   : > { %s485_s24 = sshll.u32 %s713_s20, 7  ;;  %s185_s7 = scalar_lea.vmem [#allocation9], %s511_s23 }
  0x35   : > { %s852_s6 = scalar_lea.hbm %s1062_s3, %s485_s24  ;;  %s191_s9 = sshll.u32 %s185_s7, 4  ;;  %s854_s9 = int_to_ptr.vmem [resolvable:$true] %s191_s9 }
  0x36   : > { %s856_s10 = scalar_lea.sflag [#allocation4], %s181_s15  ;;  %s613_s8 = scalar_lea.hbm %s852_s6, 640 }
  0x37   : > { %p614_p4 = scmp.ne.s32.totalorder %s852_s6, %s613_s8  ;;  %p1076_p6 = scmp.ne.s32.totalorder %s1075_s12, 0 }
  0x38   : > { %s618_s14 = scalar_lea.hbm %s1062_s3, 1920  ;;  %p619_p2 = scmp.lt.s32.totalorder %s852_s6, %s1062_s3 }
  0x39   : > { %p615_p11 = pneg %p1076_p6  ;;  %p620_p3 = scmp.lt.s32.totalorder %s618_s14, %s613_s8 }
  0x3b   : > { %p616_p12 = pnand %p615_p11, %p614_p4  ;;  %p621_p8 = por %p620_p3, %p619_p2 }
  0x3d   : > { %p617_p13 = pneg %p616_p12 }
  0x3f   : > { %p622_p10 = pnand %p621_p8, %p617_p13 }
  0x41   : > { %625 = shalt.err (!%p622_p10)
}
  0x42   : > { %s626_s15 = scalar_lea.vmem %s854_s9, 640  ;;  %s717_s23 = smov [#allocation9]  }
  0x43   : > { %p627_p1 = scmp.ne.s32.totalorder %s854_s9, %s626_s15  ;;  %s631_s24 = sshll.u32 %s717_s23, 4  ;;  %s632_s24 = int_to_ptr.vmem [resolvable:$false] %s631_s24 }
  0x44   : > { %s633_s26 = scalar_lea.vmem %s632_s24, 1280  ;;  %p634_p7 = scmp.lt.s32.totalorder %s854_s9, %s632_s24 }
  0x45   : > { %p629_p5 = pnand %p627_p1, %p615_p11  ;;  %p635_p9 = scmp.lt.s32.totalorder %s633_s26, %s626_s15 }
  0x47   : > { %p630_p0 = pneg %p629_p5  ;;  %p636_p4 = por %p635_p9, %p634_p7 }
  0x49   : > { %p637_p12 = pnand %p636_p4, %p630_p0 }
  0x4b   : > { %640 = shalt.err (!%p637_p12)
}
  0x4c   : > { %s718_s5 = smov 384   ;;  %s719_s7 = smov 128  }
  0x4d   : > { %s720_s8 = smov 8   ;;  %p1077_p11 = scmp.ne.s32.totalorder %s1073_s30, 0 }
  0x4e   : > { %535 = dma.hbm_to_vmem [thread:$0]  (!%p1076_p6), %s852_s6, 640, %s854_s9, %s856_s10, %s718_s5, %s719_s7, %s720_s8  }
  0x4f   : > { %203 = sbr.rel (%p1077_p11) target bundleno = 145 (0x91), region = 36  ;;  %p1078_p13 = scmp.eq.s32.totalorder (!%p1077_p11), %s771_s2, 0 }
  0x54   : > { %684 = dma.done.wait (%p1078_p13), [#allocation6], 16   ;;  %p1079_p2 = pmov %p1078_p13 }
  0x56   : > { %686 = vsyncadd (%p1079_p2), [#allocation6], 4294967280  ;;  %p1080_p3 = pmov %p1079_p2 }
  0x57   : > { %p1081_p8 = pmov %p1079_p2 }
  0x58   : > { %688 = dma.done.wait (%p1080_p3), [#allocation8], 16  }
  0x59   : > { %690 = vsyncadd (%p1081_p8), [#allocation8], 4294967280  ;;  %s888_s11 = sand.u32 1, %s705_s18   ;;  %p1082_p6 = scmp.ne.s32.totalorder %s1070_s27, 0 }
  0x5a   : > { %s512_s30 = smul.u32 40, %s888_s11  ;;  %s214_s12 = scalar_lea.sflag [#allocation4], %s888_s11 }
  0x5c   : > { %s892_s6 = scalar_lea.vmem [#allocation9], %s512_s30 }
  0x5d   : > { %692 = dma.done.wait (%p1082_p6), %s214_s12, 640  }
  0x5e   : > { %694 = vsyncadd (%p1082_p6), %s214_s12, 4294966656 }
  0x5f   : > { %222 = sfence }
  0x60   : > { %v899_v0 = vld [vmem:[%s892_s6] sm:$0xff]  ;;  %s245_s9 = sld [smem:[#allocation3]]  ;;  %v904_v1 = vld [vmem:[%s892_s6 + $0x8] sm:$0xff]  ;;  %v938_v3 = vld [vmem:[%s892_s6 + $0x10] sm:$0xff]  ;;  %p1090_p1 = scmp.ne.s32.totalorder %s1071_s28, 0 }
  0x61   : > { %s901_s10 = sld [smem:[#allocation3 + $0x1]]  ;;  %vm244_vm0 = vcmp.eq.s32.totalorder %v899_v0, 0  ;;  %vm248_vm1 = vcmp.eq.s32.totalorder %v899_v0, 1  ;;  %vm252_vm2 = vcmp.eq.s32.totalorder %v899_v0, 2  ;;  %vm256_vm3 = vcmp.eq.s32.totalorder %v899_v0, 3  ;;  %v503_v44 = vld [vmem:[%s892_s6 + $0x18] sm:$0xff] }
  0x62   : > { %s909_s13 = sld [smem:[#allocation3 + $0x2]]  ;;  %vm260_vm4 = vcmp.eq.s32.totalorder %v899_v0, 4  ;;  %vm294_vm9 = vcmp.eq.s32.totalorder %v904_v1, 0  ;;  %vm296_vm10 = vcmp.eq.s32.totalorder %v904_v1, 1  ;;  %vm298_vm11 = vcmp.eq.s32.totalorder %v904_v1, 2  ;;  %v506_v50 = vld [vmem:[%s892_s6 + $0x20] sm:$0xff] }
  0x63   : > { %s912_s27 = sld [smem:[#allocation3 + $0x3]]  ;;  %vm300_vm13 = vcmp.eq.s32.totalorder %v904_v1, 3  ;;  %vm302_vm14 = vcmp.eq.s32.totalorder %v904_v1, 4  ;;  %vm304_vm15 = vcmp.eq.s32.totalorder %v904_v1, 5  ;;  %vm308_vm6 = vcmp.eq.s32.totalorder %v904_v1, 7  ;;  %s508_s6 = sshll.u32 %s771_s2, 7 }
  0x64   : > { %s918_s14 = sld [smem:[#allocation3 + $0x4]]  ;;  %vm310_vm5 = vcmp.eq.s32.totalorder %v904_v1, 8  ;;  %vm312_vm12 = vcmp.eq.s32.totalorder %v904_v1, 9  ;;  %vm288_vm8 = vcmp.eq.s32.totalorder %v899_v0, 11  ;;  %vm314_vm7 = vcmp.eq.s32.totalorder %v904_v1, 10 }
  0x65   : > { %s924_s16 = sld [smem:[#allocation3 + $0x5]] }
  0x66   : > { %v246_v2 = vstv %s245_s9  ;;  %s931_s21 = sld [smem:[#allocation3 + $0x6]]  ;;  %s489_s9 = sshll.u32 %s888_s11, 3 }
  0x67   : > { %v247_v4 = vsel %vm244_vm0, %v246_v2, 0.0  ;;  %v250_v5 = vstv %s901_s10  ;;  %s496_s15 = sld [smem:[#allocation3 + $0x7]]  ;;  %v295_v6 = vsel %vm294_vm9, %v246_v2, 0.0  ;;  %vm316_vm0 = vcmp.eq.s32.totalorder %v904_v1, 11  ;;  %s242_s10 = scalar_lea.vmem [#allocation10], %s489_s9 }
  0x68   : > { %v251_v7 = vsel %vm248_vm1, %v250_v5, %v247_v4  ;;  %v254_v8 = vstv %s909_s13  ;;  %s497_s23 = sld [smem:[#allocation3 + $0x8]]  ;;  %v297_v9 = vsel %vm296_vm10, %v250_v5, %v295_v6  ;;  %vm321_vm9 = vcmp.eq.s32.totalorder %v938_v3, 0  ;;  %s388_s13 = sshll.u32 %s242_s10, 4  ;;  %s389_s13 = int_to_ptr.vmem [resolvable:$true] %s388_s13 }
  0x69   : > { %v255_v10 = vsel %vm252_vm2, %v254_v8, %v251_v7  ;;  %v258_v11 = vstv %s912_s27  ;;  %s498_s24 = sld [smem:[#allocation3 + $0x9]]  ;;  %v299_v12 = vsel %vm298_vm11, %v254_v8, %v297_v9  ;;  %v322_v16 = vsel %vm321_vm9, %v246_v2, 0.0 }
  0x6a   : > { %v259_v13 = vsel %vm256_vm3, %v258_v11, %v255_v10  ;;  %v262_v14 = vstv %s918_s14  ;;  %s499_s26 = sld [smem:[#allocation3 + $0xa]]  ;;  %v301_v15 = vsel %vm300_vm13, %v258_v11, %v299_v12  ;;  %vm323_vm1 = vcmp.eq.s32.totalorder %v938_v3, 1 }
  0x6b   : > { %v263_v17 = vsel %vm260_vm4, %v262_v14, %v259_v13  ;;  %v266_v18 = vstv %s924_s16  ;;  %s500_s5 = sld [smem:[#allocation3 + $0xb]]  ;;  %v303_v19 = vsel %vm302_vm14, %v262_v14, %v301_v15  ;;  %vm1083_vm2 = vcmp.eq.s32.totalorder %v899_v0, 5  ;;  %s386_s16 = scalar_lea.hbm %s1063_s4, %s508_s6 }
  0x6c   : > { %v267_v20 = vsel %vm1083_vm2, %v266_v18, %v263_v17  ;;  %v270_v21 = vstv %s931_s21  ;;  %v305_v22 = vsel %vm304_vm15, %v266_v18, %v303_v19  ;;  %v324_v23 = vsel %vm323_vm1, %v250_v5, %v322_v16  ;;  %s980_s7 = sld [smem:[#allocation7]]  ;;  %s375_s21 = scalar_lea.sflag [#allocation5], %s888_s11 }
  0x6d   : > { %vm1084_vm3 = vcmp.eq.s32.totalorder %v899_v0, 6  ;;  %v274_v25 = vstv %s496_s15  ;;  %vm1085_vm4 = vcmp.eq.s32.totalorder %v904_v1, 6  ;;  %vm325_vm10 = vcmp.eq.s32.totalorder %v938_v3, 2  ;;  %s986_s8 = sld [smem:[#allocation7 + $0x1]]  ;;  %s641_s15 = scalar_lea.vmem %s389_s13, 128 }
  0x6e   : > { %v271_v24 = vsel %vm1084_vm3, %v270_v21, %v267_v20  ;;  %v307_v26 = vsel %vm1085_vm4, %v270_v21, %v305_v22  ;;  %vm1086_vm11 = vcmp.eq.s32.totalorder %v899_v0, 7  ;;  %v278_v28 = vstv %s497_s23  ;;  %s993_s30 = sld [smem:[#allocation7 + $0x2]]  ;;  %p642_p10 = scmp.ne.s32.totalorder %s389_s13, %s641_s15 }
  0x6f   : > { %v275_v27 = vsel %vm1086_vm11, %v274_v25, %v271_v24  ;;  %v309_v29 = vsel %vm308_vm6, %v274_v25, %v307_v26  ;;  %v326_v30 = vsel %vm325_vm10, %v254_v8, %v324_v23  ;;  %vm1087_vm13 = vcmp.eq.s32.totalorder %v899_v0, 8  ;;  %s370_s12 = sld [smem:[#allocation2]]  ;;  %s721_s23 = smov [#allocation10]  }
  0x70   : > { %v279_v31 = vsel %vm1087_vm13, %v278_v28, %v275_v27  ;;  %v282_v32 = vstv %s498_s24  ;;  %v311_v33 = vsel %vm310_vm5, %v278_v28, %v309_v29  ;;  %vm327_vm14 = vcmp.eq.s32.totalorder %v938_v3, 3  ;;  %p643_p5 = pnand %p642_p10, %p1090_p1  ;;  %s645_s24 = sshll.u32 %s721_s23, 4  ;;  %s646_s24 = int_to_ptr.vmem [resolvable:$false] %s645_s24 }
  0x71   : > { %vm1088_vm15 = vcmp.eq.s32.totalorder %v899_v0, 9  ;;  %v286_v35 = vstv %s499_s26  ;;  %v313_v36 = vsel %vm312_vm12, %v282_v32, %v311_v33  ;;  %v328_v37 = vsel %vm327_vm14, %v258_v11, %v326_v30  ;;  %s647_s2 = scalar_lea.vmem %s646_s24, 256  ;;  %p648_p7 = scmp.lt.s32.totalorder %s389_s13, %s646_s24 }
  0x72   : > { %v283_v34 = vsel %vm1088_vm15, %v282_v32, %v279_v31  ;;  %vm1089_vm6 = vcmp.eq.s32.totalorder %v899_v0, 10  ;;  %v290_v39 = vstv %s500_s5  ;;  %v315_v40 = vsel %vm314_vm7, %v286_v35, %v313_v36  ;;  %p644_p0 = pneg %p643_p5  ;;  %p649_p9 = scmp.lt.s32.totalorder %s647_s2, %s641_s15 }
  0x73   : > { %v287_v38 = vsel %vm1089_vm6, %v286_v35, %v283_v34  ;;  %vm329_vm5 = vcmp.eq.s32.totalorder %v938_v3, 4  ;;  %v317_v42 = vsel %vm316_vm0, %v290_v39, %v315_v40  ;;  %vm331_vm12 = vcmp.eq.s32.totalorder %v938_v3, 5 }
  0x74   : > { %v291_v41 = vsel %vm288_vm8, %v290_v39, %v287_v38  ;;  %v330_v43 = vsel %vm329_vm5, %v262_v14, %v328_v37  ;;  %vm333_vm9 = vcmp.eq.s32.totalorder %v938_v3, 6  ;;  %vm335_vm7 = vcmp.eq.s32.totalorder %v938_v3, 7  ;;  %p650_p4 = por %p649_p9, %p648_p7 }
  0x75   : > { %v318_v45 = vmul.f32 %v317_v42, %v291_v41  ;;  %v332_v46 = vsel %vm331_vm12, %v266_v18, %v330_v43  ;;  %vm337_vm8 = vcmp.eq.s32.totalorder %v938_v3, 8  ;;  %vm339_vm1 = vcmp.eq.s32.totalorder %v938_v3, 9 }
  0x76   : > { %v334_v47 = vsel %vm333_vm9, %v270_v21, %v332_v46  ;;  %vm341_vm0 = vcmp.eq.s32.totalorder %v938_v3, 10  ;;  %vm343_vm2 = vcmp.eq.s32.totalorder %v938_v3, 11  ;;  %vm348_vm3 = vcmp.eq.s32.totalorder %v503_v44, 12  ;;  %p651_p12 = pnand %p650_p4, %p644_p0 }
  0x77   : > { %v336_v48 = vsel %vm335_vm7, %v274_v25, %v334_v47  ;;  %v350_v49 = vstv %s980_s7  ;;  %vm352_vm4 = vcmp.eq.s32.totalorder %v503_v44, 13  ;;  %v354_v53 = vstv %s986_s8 }
  0x78   : > { %v338_v51 = vsel %vm337_vm8, %v278_v28, %v336_v48  ;;  %v351_v52 = vsel %vm348_vm3, %v350_v49, 0.0  ;;  %vm356_vm10 = vcmp.eq.s32.totalorder %v503_v44, 14  ;;  %v358_v56 = vstv %s993_s30 }
  0x79   : > { %v340_v54 = vsel %vm339_vm1, %v282_v32, %v338_v51  ;;  %v355_v55 = vsel %vm352_vm4, %v354_v53, %v351_v52  ;;  %vm363_vm11 = vcmp.eq.s32.totalorder %v506_v50, 12  ;;  %vm365_vm13 = vcmp.eq.s32.totalorder %v506_v50, 13 }
  0x7a   : > { %v342_v57 = vsel %vm341_vm0, %v286_v35, %v340_v54  ;;  %v359_v59 = vsel %vm356_vm10, %v358_v56, %v355_v55  ;;  %v364_v60 = vsel %vm363_vm11, %v350_v49, 0.0  ;;  %vm367_vm14 = vcmp.eq.s32.totalorder %v506_v50, 14 }
  0x7b   : > { %v344_v58 = vsel %vm343_vm2, %v290_v39, %v342_v57  ;;  %v366_v62 = vsel %vm365_vm13, %v354_v53, %v364_v60  ;;  %v371_v1 = vstv %s370_s12 }
  0x7c   : > { %v345_v61 = vmul.f32 %v344_v58, %v318_v45  ;;  %v368_v63 = vsel %vm367_vm14, %v358_v56, %v366_v62 }
  0x7e   : > { %v360_v0 = vmul.f32 %v359_v59, %v345_v61 }
  0x80   : > { %v369_v2 = vmul.f32 %v368_v63, %v360_v0 }
  0x82   : > { %v372_v4 = vmul.f32 %v371_v1, %v369_v2 }
  0x84   : > { %373 = vst [vmem:[%s242_s10] sm:$0xff] %v372_v4 }
  0x85   : > { %654 = shalt.err (!%p651_p12)
}
  0x86   : > { %s655_s26 = scalar_lea.hbm %s386_s16, 128  ;;  %s659_s7 = scalar_lea.hbm %s1063_s4, 384 }
  0x87   : > { %p656_p11 = scmp.ne.s32.totalorder %s386_s16, %s655_s26  ;;  %p660_p3 = scmp.lt.s32.totalorder %s386_s16, %s1063_s4 }
  0x88   : > { %p661_p8 = scmp.lt.s32.totalorder %s659_s7, %s655_s26 }
  0x89   : > { %p657_p13 = pnand %p656_p11, %p1090_p1 }
  0x8a   : > { %p662_p6 = por %p661_p8, %p660_p3 }
  0x8b   : > { %p658_p2 = pneg %p657_p13 }
  0x8d   : > { %p663_p10 = pnand %p662_p6, %p658_p2 }
  0x8f   : > { %666 = shalt.err (!%p663_p10)
}
  0x90   : > { %523 = dma.vmem_to_hbm [thread:$0]  (%p1090_p1), %s389_s13, 128, %s386_s16, %s375_s21  }
  0x91 PF: > { %p545_p5 = scmp.ge.s32.totalorder %s713_s20, 2  ;;  %s400_s12 = sand.u32 1, %s701_s17  }
  0x92   : > { %p1091_p0 = scmp.ne.s32.totalorder %s1072_s29, 0  ;;  %s401_s9 = scalar_lea.sflag [#allocation5], %s400_s12 }
  0x94   : > { %p537_p7 = pnand %p545_p5, %p1091_p0 }
  0x96   : > { %p538_p9 = pneg %p537_p7 }
  0x98   : > { %696 = dma.done.wait (%p538_p9), %s401_s9, 128  }
  0x99   : > { %698 = vsyncadd (%p538_p9), %s401_s9, 4294967168  ;;  %p20_p4 = scmp.ge.s32.totalorder %s775_s22, 5   ;;  %s1092_s17 = smov %s705_s18 }
  0x9a   : > { %s1093_s18 = smov %s709_s19  ;;  %s1094_s19 = smov %s787_s25 }
  0x9b   : > { %s1095_s20 = smov %s775_s22  ;;  %22 = sbr.rel (!%p20_p4) target bundleno = 9 (0x9), region = 94 }
  0xa0   :  { %406 = vsyncpa [#allocation4], 1 }
  0xa1   :  { %408 = vsyncpa [#allocation4 + $0x1], 1 }
  0xa2   :  { %409 = vsyncpa [#allocation5], 1 }
  0xa3   :  { %411 = vsyncpa [#allocation5 + $0x1], 1 }
  0xa4   :  { %412 = vsyncpa [#allocation6], 1 }
  0xa5   :  { %414 = vsyncpa [#allocation6 + $0x1], 1 }
  0xa6   :  { %415 = vsyncpa [#allocation8], 1 }

</bundles_post_ra>
